<compile_context>
chip_gen: v6e
topology: v6e:2x2x1
jax: 0.10.0
libtpu: 0.0.40
codegen_flags: <defaults>
</compile_context>

<pallas_src>
import types

import jax
import jax.numpy as jnp
from jax.experimental import pallas as pl
from jax.experimental.pallas import tpu as pltpu


def _round_up(x, m):
    return ((x + m - 1) // m) * m


def _physical_vmem_bytes():
    """Best-effort per-core VMEM capacity; conservative 64 MiB (v7x) fallback."""
    cap = 0
    try:
        info = pltpu.get_tpu_info()
        for name in ("vmem_capacity_bytes", "vmem_bytes", "vmem_size_bytes"):
            v = getattr(info, name, None)
            if v:
                cap = int(v)
                break
    except Exception:
        cap = 0
    return cap if cap > 0 else 64 * 1024 * 1024


def _pick_seq_tile(B, S, D, FP, budget_bytes, max_tile=None):
    """Largest sequence tile (full S, else a 128-multiple dividing S) within budget."""
    def footprint(ts):
        f32 = 4
        return (f32 * B * ts * FP              # feat_scr (padded augmented feature tile)
                + 2 * f32 * B * ts * D         # double-buffered obs block
                + 2 * f32 * B * ts * 5         # double-buffered extras block
                + 2 * f32 * FP * FP)           # resident augmented-gram accumulator
    cap = S if max_tile is None else min(S, max_tile)
    if S <= cap and footprint(S) <= budget_bytes:
        return S
    ts = (cap // 128) * 128
    while ts >= 128:
        if S % ts == 0 and footprint(ts) <= budget_bytes:
            return ts
        ts -= 128
    return S   # nothing smaller divides S cleanly; fall back to the full sequence


def gram_kernel(obs_ref, ext_ref, acc_ref, feat_scr):
    """Accumulate the augmented gram A^T A over one sequence tile.

    obs_ref : (B, TS, D)   observations (natural batch-major layout)
    ext_ref : (B, TS, 5)   per-row extras [t, t^2, t^3, 1, ret]
    acc_ref : (FP, FP)     per-split resident accumulator (leading split dim squeezed)
    feat_scr: (B, TS, FP)  VMEM scratch: augmented feature tile, pad lanes stay zero
    """
    i = pl.program_id(1)   # sequence-tile step (reduction axis, last)

    @pl.when(i == 0)
    def _init():
        acc_ref[...] = jnp.zeros_like(acc_ref)
        feat_scr[...] = jnp.zeros_like(feat_scr)   # pad lanes (>= F+1) stay zero forever

    obs = obs_ref[...]                             # (B, TS, D) f32
    B, TS, D = obs.shape
    FP = acc_ref.shape[0]

    # Augmented feature layout: [obs(D), obs^2(D), t, t^2, t^3, 1, ret], zero pad to FP.
    feat_scr[:, :, 0:D] = obs
    feat_scr[:, :, D:2 * D] = obs * obs
    feat_scr[:, :, 2 * D:2 * D + 5] = ext_ref[...]

    a = feat_scr[...].reshape(B * TS, FP)          # free merge when TS % 8 == 0
    # One row-contracting dot_general yields X^T X and X^T y (the ret column) together.
    acc_ref[...] += jax.lax.dot_general(
        a, a, dimension_numbers=(((0,), (0,)), ((), ())),
        preferred_element_type=jnp.float32)


def value_kernel(obs_ref, tv_ref, w_ref, out_ref):
    """value[b, s] = obs.w_obs + obs^2.w_sq + tv[s]  (features recomputed on the fly)."""
    obs = obs_ref[...]                             # (B, TS, D)
    w = w_ref[...]                                 # (1, 2*D) = [w_obs | w_obs^2]
    B, TS, D = obs.shape

    w_obs = w[:, 0:D].reshape(1, 1, D)
    w_sq = w[:, D:2 * D].reshape(1, 1, D)

    # Single fused cross-lane reduction; time-feature value tv is precomputed per s.
    v = jnp.sum(obs * (w_obs + obs * w_sq), axis=-1)   # (B, TS)
    out_ref[...] = v + tv_ref[...]                     # (1, TS) broadcast over batch


class LinearFeatureBaselinePallas:
    def __init__(self, input_size, args, reg_coeff=1e-5, max_seq_tile=None):
        self.input_size = input_size
        self.args = args
        self._reg_coeff = reg_coeff
        self.feature_size = 2 * input_size + 4
        # PyTorch zero-inits the weight; it is overwritten by the fit inside
        # forward, so it only exists for parity.
        self.weight = jnp.zeros((self.feature_size,), jnp.float32)
        self._eye = jnp.eye(self.feature_size, dtype=jnp.float32)

        # +1 lane carries the returns column inside the padded feature matrix.
        self._fp = _round_up(self.feature_size + 1, 128)

        # Generation-aware VMEM budget (48 MiB on a 64 MiB v7x core, 96 MiB on
        # 128 MiB v5e/v6e) and matching vmem limit for the compiler.
        cap = _physical_vmem_bytes()
        self._vmem_budget = (cap * 3) // 4
        self._vmem_limit = int(min(self._vmem_budget + (16 << 20), (cap * 7) // 8))
        self._max_seq_tile = max_seq_tile   # optional cap (mainly for testing tiling)

        # Hoisted per-horizon constants: discount-power matrix and time features.
        S = args.ep_horizon
        idx = jnp.arange(S)
        delta = (idx[:, None] - idx[None, :]).astype(jnp.float32)
        self._gamma_pow = jnp.where(
            delta >= 0.0,
            jnp.power(jnp.float32(args.discount), jnp.maximum(delta, 0.0)),
            0.0).astype(jnp.float32)                                   # (S, S)
        t = (jnp.arange(S, dtype=jnp.float32) / 100.0)[:, None]
        self._tf = jnp.concatenate([t, t * t, t * t * t, jnp.ones_like(t)], axis=1)  # (S,4)

    def __call__(self, obs, reward):
        # obs: (B, S, D), reward: (B, S) -> value: (B, S)
        B, S, D = obs.shape
        assert S == self.args.ep_horizon
        assert D == self.input_size
        F = self.feature_size
        FP = self._fp

        TS = _pick_seq_tile(B, S, D, FP, self._vmem_budget, self._max_seq_tile)
        assert S % TS == 0
        num_tiles = S // TS
        nsplit = 2 if (num_tiles % 2 == 0 and num_tiles >= 2) else 1   # 2 TCs on v7x
        tiles_per_split = num_tiles // nsplit

        obs = obs.astype(jnp.float32)
        reward = reward.astype(jnp.float32)

        # Discounted returns: one (B,S)x(S,S) matmul against the precomputed
        # lower-triangular discount-power matrix (no unrolled S-step loop).
        return_bs = jnp.matmul(reward, self._gamma_pow,
                               precision=jax.lax.Precision.HIGHEST)    # (B, S)
        # Re-order so ret_bs[b, s] pairs with feature row (s, b): reproduces the
        # seq-major featmat vs batch-major returns flattening of the PyTorch code.
        ret_bs = return_bs.reshape(-1).reshape(S, B).T                 # (B, S)

        # Pre-packed per-row extras [t, t^2, t^3, 1, ret]; the ret column rides in
        # the first padding lane (index F) so X^T y is a by-product of the gram.
        extras = jnp.concatenate(
            [jnp.broadcast_to(self._tf[None], (B, S, 4)), ret_bs[..., None]], axis=-1)

        partials = pl.pallas_call(
            gram_kernel,
            grid=(nsplit, tiles_per_split),
            in_specs=[
                pl.BlockSpec((B, TS, D), lambda c, i: (0, c * tiles_per_split + i, 0)),
                pl.BlockSpec((B, TS, 5), lambda c, i: (0, c * tiles_per_split + i, 0)),
            ],
            out_specs=pl.BlockSpec((None, FP, FP), lambda c, i: (c, 0, 0)),
            out_shape=jax.ShapeDtypeStruct((nsplit, FP, FP), jnp.float32),
            scratch_shapes=[pltpu.VMEM((B, TS, FP), jnp.float32)],
            compiler_params=pltpu.CompilerParams(
                dimension_semantics=("parallel", "arbitrary"),
                vmem_limit_bytes=self._vmem_limit),
        )(obs, extras)

        gram = partials.sum(axis=0)                 # (FP, FP) augmented gram [X|y]^T [X|y]
        xtx = gram[:F, :F]
        xty = gram[:F, F][:, None]                  # X^T y from the appended ret column

        # TODO(synk): torch.lstsq's escalating-regularization retry loop has no
        # clean Pallas equivalent; the regularized normal equations are solved
        # once in plain JAX.
        coeffs = jnp.linalg.solve(xtx + self._reg_coeff * self._eye, xty)   # (F, 1)
        self.weight = coeffs.reshape(-1)

        w_obs_sq = coeffs[:2 * D].reshape(1, 2 * D)
        # Per-timestep time-feature contribution, computed once and broadcast over B.
        tv = jnp.matmul(self._tf, coeffs[2 * D:],
                        precision=jax.lax.Precision.HIGHEST).reshape(1, S)

        value = pl.pallas_call(
            value_kernel,
            grid=(num_tiles,),
            in_specs=[
                pl.BlockSpec((B, TS, D), lambda i: (0, i, 0)),
                pl.BlockSpec((1, TS), lambda i: (0, i)),
                pl.BlockSpec((1, 2 * D), lambda i: (0, 0)),
            ],
            out_specs=pl.BlockSpec((B, TS), lambda i: (0, i)),
            out_shape=jax.ShapeDtypeStruct((B, S), jnp.float32),
            compiler_params=pltpu.CompilerParams(
                dimension_semantics=("parallel",),
                vmem_limit_bytes=self._vmem_limit),
        )(obs, tv, w_obs_sq)

        return value                                                    # (B, S)


def _reference(obs, reward, args, reg_coeff=1e-5):
    """Pure-JAX reference mirroring the PyTorch code exactly."""
    B, S, D = obs.shape
    F = 2 * D + 4
    obs_t = jnp.transpose(obs, (1, 0, 2)).astype(jnp.float32)
    ones = jnp.ones((S, B, 1), jnp.float32)
    t = (jnp.arange(S, dtype=jnp.float32).reshape(-1, 1, 1) * ones) / 100.0
    feat = jnp.concatenate([obs_t, obs_t ** 2, t, t ** 2, t ** 3, ones], axis=2)
    featmat = feat.reshape(-1, F)

    R = jnp.zeros((B,), jnp.float32)
    cols = []
    for ts in reversed(range(S)):
        R = reward[:, ts] + args.discount * R
        cols.insert(0, R)
    ret = jnp.stack(cols, axis=1).reshape(-1, 1)             # batch-major flatten

    xty = featmat.T @ ret
    xtx = featmat.T @ featmat
    w = jnp.linalg.solve(xtx + reg_coeff * jnp.eye(F), xty).reshape(-1)
    value = featmat @ w
    return value.reshape(S, B).T


if __name__ == "__main__":
    jax.config.update("jax_default_matmul_precision", "highest")

    def _check(B, S, D, discount, seed, max_seq_tile=None):
        args = types.SimpleNamespace(ep_horizon=S, discount=discount)
        key = jax.random.PRNGKey(seed)
        k_obs, k_rew = jax.random.split(key)
        obs = jax.random.normal(k_obs, (B, S, D), dtype=jnp.float32)
        reward = jax.random.normal(k_rew, (B, S), dtype=jnp.float32)

        baseline = LinearFeatureBaselinePallas(input_size=D, args=args,
                                               max_seq_tile=max_seq_tile)
        out = jax.block_until_ready(baseline(obs, reward))
        ref = _reference(obs, reward, args)
        assert out.shape == (B, S)
        assert jnp.allclose(out, ref, rtol=5e-3, atol=5e-3), (out, ref)

    _check(B=2, S=8, D=4, discount=0.99, seed=0)
    _check(B=3, S=16, D=5, discount=0.95, seed=1)
    # Forces the multi-tile path (TS=128, 2 sequence tiles split over the
    # "parallel" axis with per-split partial grams summed in JAX).
    _check(B=2, S=256, D=4, discount=0.99, seed=2, max_seq_tile=128)
    print("KERNEL_OK")
</pallas_src>

<mosaic_0001>
module attributes {stable_mosaic.version = 11 : i64} {
  func.func @gram_kernel(%arg0: i32, %arg1: i32, %arg2: memref<2x8x4xf32, #tpu.memory_space<vmem>>, %arg3: memref<2x8x5xf32, #tpu.memory_space<vmem>>, %arg4: memref<1x128x128xf32, #tpu.memory_space<vmem>>, %arg5: memref<2x8x128xf32, #tpu.memory_space<vmem>>) attributes {dimension_semantics = [#tpu.dimension_semantics<parallel>, #tpu.dimension_semantics<arbitrary>], iteration_bounds = array<i64: 1, 1>, scalar_prefetch = 0 : i64, scratch_operands = 1 : i64, tpu.core_type = #tpu.core_type<tc>, window_params = [{transform_indices = @transform_0, window_bounds = array<i64: 2, 8, 4>}, {transform_indices = @transform_1, window_bounds = array<i64: 2, 8, 5>}, {transform_indices = @transform_2, window_bounds = array<i64: 1, 128, 128>}]} {
    %c0_i32 = arith.constant 0 : i32
    %0 = arith.cmpi eq, %arg1, %c0_i32 : i32
    %1 = arith.extui %0 : i1 to i32
    %c0_i32_0 = arith.constant 0 : i32
    %2 = arith.cmpi ne, %1, %c0_i32_0 : i32
    scf.if %2 {
      %cst_22 = arith.constant 0.000000e+00 : f32
      %18 = vector.broadcast %cst_22 : f32 to vector<128x128xf32>
      %c0_23 = arith.constant 0 : index
      %c0_24 = arith.constant 0 : index
      %c0_25 = arith.constant 0 : index
      %19 = vector.load %arg4[%c0_23, %c0_24, %c0_25] : memref<1x128x128xf32, #tpu.memory_space<vmem>>, vector<1x128x128xf32>
      %20 = vector.shape_cast %19 : vector<1x128x128xf32> to vector<128x128xf32>
      %21 = vector.shape_cast %18 : vector<128x128xf32> to vector<1x128x128xf32>
      tpu.vector_store %arg4[%c0_23, %c0_24, %c0_25], %21 {strides = array<i32>} : memref<1x128x128xf32, #tpu.memory_space<vmem>>, vector<1x128x128xf32>,
      %cst_26 = arith.constant 0.000000e+00 : f32
      %22 = vector.broadcast %cst_26 : f32 to vector<2x8x128xf32>
      %c0_27 = arith.constant 0 : index
      %c0_28 = arith.constant 0 : index
      %c0_29 = arith.constant 0 : index
      %23 = vector.load %arg5[%c0_27, %c0_28, %c0_29] : memref<2x8x128xf32, #tpu.memory_space<vmem>>, vector<2x8x128xf32>
      tpu.vector_store %arg5[%c0_27, %c0_28, %c0_29], %22 {strides = array<i32>} : memref<2x8x128xf32, #tpu.memory_space<vmem>>, vector<2x8x128xf32>,
    } else {
    }
    %c0 = arith.constant 0 : index
    %c0_1 = arith.constant 0 : index
    %c0_2 = arith.constant 0 : index
    %3 = vector.load %arg2[%c0, %c0_1, %c0_2] : memref<2x8x4xf32, #tpu.memory_space<vmem>>, vector<2x8x4xf32>
    %c0_3 = arith.constant 0 : index
    %c0_4 = arith.constant 0 : index
    %c0_5 = arith.constant 0 : index
    %4 = vector.load %arg5[%c0_3, %c0_4, %c0_5] : memref<2x8x128xf32, #tpu.memory_space<vmem>>, vector<2x8x4xf32>
    tpu.vector_store %arg5[%c0_3, %c0_4, %c0_5], %3 {strides = array<i32>} : memref<2x8x128xf32, #tpu.memory_space<vmem>>, vector<2x8x4xf32>,
    %5 = arith.mulf %3, %3 : vector<2x8x4xf32>
    %c0_6 = arith.constant 0 : index
    %c0_7 = arith.constant 0 : index
    %c4 = arith.constant 4 : index
    %6 = vector.load %arg5[%c0_6, %c0_7, %c4] : memref<2x8x128xf32, #tpu.memory_space<vmem>>, vector<2x8x4xf32>
    tpu.vector_store %arg5[%c0_6, %c0_7, %c4], %5 {strides = array<i32>} : memref<2x8x128xf32, #tpu.memory_space<vmem>>, vector<2x8x4xf32>,
    %c0_8 = arith.constant 0 : index
    %c0_9 = arith.constant 0 : index
    %c0_10 = arith.constant 0 : index
    %7 = vector.load %arg3[%c0_8, %c0_9, %c0_10] : memref<2x8x5xf32, #tpu.memory_space<vmem>>, vector<2x8x5xf32>
    %c0_11 = arith.constant 0 : index
    %c0_12 = arith.constant 0 : index
    %c8 = arith.constant 8 : index
    %8 = vector.load %arg5[%c0_11, %c0_12, %c8] : memref<2x8x128xf32, #tpu.memory_space<vmem>>, vector<2x8x5xf32>
    tpu.vector_store %arg5[%c0_11, %c0_12, %c8], %7 {strides = array<i32>} : memref<2x8x128xf32, #tpu.memory_space<vmem>>, vector<2x8x5xf32>,
    %c0_13 = arith.constant 0 : index
    %c0_14 = arith.constant 0 : index
    %c0_15 = arith.constant 0 : index
    %9 = vector.load %arg5[%c0_13, %c0_14, %c0_15] : memref<2x8x128xf32, #tpu.memory_space<vmem>>, vector<2x8x128xf32>
    %10 = vector.shape_cast %9 : vector<2x8x128xf32> to vector<16x128xf32>
    %c0_16 = arith.constant 0 : index
    %c0_17 = arith.constant 0 : index
    %c0_18 = arith.constant 0 : index
    %11 = vector.load %arg4[%c0_16, %c0_17, %c0_18] : memref<1x128x128xf32, #tpu.memory_space<vmem>>, vector<1x128x128xf32>
    %12 = vector.shape_cast %11 : vector<1x128x128xf32> to vector<128x128xf32>
    %cst = arith.constant dense<0.000000e+00> : vector<128x128xf32>
    %13 = tpu.matmul %10, %10, %cst {dimension_numbers = #tpu.dot_dimension_numbers<[0], [0], [1], [1], [0, 1, 1, 1], [], []>, precision = #tpu.contract_precision<fp32>} : vector<16x128xf32>, vector<16x128xf32>, vector<128x128xf32> -> vector<128x128xf32>
    %14 = arith.addf %12, %13 : vector<128x128xf32>
    %c0_19 = arith.constant 0 : index
    %c0_20 = arith.constant 0 : index
    %c0_21 = arith.constant 0 : index
    %15 = vector.load %arg4[%c0_19, %c0_20, %c0_21] : memref<1x128x128xf32, #tpu.memory_space<vmem>>, vector<1x128x128xf32>
    %16 = vector.shape_cast %15 : vector<1x128x128xf32> to vector<128x128xf32>
    %17 = vector.shape_cast %14 : vector<128x128xf32> to vector<1x128x128xf32>
    tpu.vector_store %arg4[%c0_19, %c0_20, %c0_21], %17 {strides = array<i32>} : memref<1x128x128xf32, #tpu.memory_space<vmem>>, vector<1x128x128xf32>,
    return
  }
  func.func @transform_0(%arg0: i32, %arg1: i32) -> (i32, i32, i32) {
    %c1_i32 = arith.constant 1 : i32
    %0 = arith.muli %arg0, %c1_i32 : i32
    %1 = arith.addi %0, %arg1 : i32
    %c0_i32 = arith.constant 0 : i32
    %c0_i32_0 = arith.constant 0 : i32
    %c0_i32_1 = arith.constant 0 : i32
    return %c0_i32, %1, %c0_i32_0 : i32, i32, i32
  }
  func.func @transform_1(%arg0: i32, %arg1: i32) -> (i32, i32, i32) {
    %c1_i32 = arith.constant 1 : i32
    %0 = arith.muli %arg0, %c1_i32 : i32
    %1 = arith.addi %0, %arg1 : i32
    %c0_i32 = arith.constant 0 : i32
    %c0_i32_0 = arith.constant 0 : i32
    %c0_i32_1 = arith.constant 0 : i32
    return %c0_i32, %1, %c0_i32_0 : i32, i32, i32
  }
  func.func @transform_2(%arg0: i32, %arg1: i32) -> (i32, i32, i32) {
    %c0_i32 = arith.constant 0 : i32
    %c0_i32_0 = arith.constant 0 : i32
    %c0_i32_1 = arith.constant 0 : i32
    return %arg0, %c0_i32, %c0_i32_0 : i32, i32, i32
  }
}

</mosaic_0001>

<bundles_post_ra>
// kernel: tpu_custom_call.1
= control target key start
LH: loop header
LB: loop body
LE: loop exit
PB: predicated region body
PF: predicated region fallthrough
CT: control target
= control target key end

     0   :  { %vm70_vm0 = vcmask 31744   ;;  %s2099_s0 = inlined_call_operand.vmem [shape: f32[2,8,4], index: 0, kind: input, shape index: {}]   ;;  %s2100_s1 = inlined_call_operand.vmem [shape: f32[2,8,5], index: 1, kind: input, shape index: {}]   ;;  %s2101_s2 = inlined_call_operand.hbm [shape: f32[1,128,128], index: 2, kind: output, shape index: {}]  }
   0x1   :  { %v69_v0 = vld [vmem:[%s2099_s0 + $0x8] sm:$0xff]  ;;  %v68_v1 = vld [vmem:[%s2099_s0] sm:$0xff] }
   0x2   :  { %v74_v2 = vmul.f32 %v69_v0, %v69_v0  ;;  %v73_v3 = vmul.f32 %v68_v1, %v68_v1 }
   0x3   :  { %7 = vsyncpa [#allocation4], 0  ;;  %v1665_v4 = vmov 0.0   ;;  %s1666_s13 = smov 4   ;;  %v87_v5 = vld [vmem:[%s2100_s1 + $0x8] sm:$0xff]  ;;  %v86_v6 = vld [vmem:[%s2100_s1] sm:$0xff] }
   0x4   :  { %67 = vst [vmem:[#allocation2 + $0x8] sm:$0xff] %v1665_v4  ;;  %66 = vst [vmem:[#allocation2] sm:$0xff] %v1665_v4  ;;  %79 = vrot.lane.b32.xlu1 %v74_v2, %s1666_s13  ;;  %77 = vrot.lane.b32.xlu0 %v73_v3, %s1666_s13  ;;  %s1667_s0 = smov 8   ;;  %vm83_vm1 = vcmask 64544   ;;  %vm96_vm2 = vcmask 105536   ;;  %vm149_vm3 = vcmask 130048  }
   0x5   :  { %72 = vst.msk [vmem:[#allocation2 + $0x8] sm:$0xff] %vm70_vm0, %v69_v0  ;;  %71 = vst.msk [vmem:[#allocation2] sm:$0xff] %vm70_vm0, %v68_v1  ;;  %s1668_s1 = smov [#allocation3]  }
   0x6   :  { %s1339_s18 = sshll.u32 %s1668_s1, 4  ;;  %s1340_s18 = int_to_ptr.vmem [resolvable:$true] %s1339_s18 }
   0x7   :  { %s1643_s19 = scalar_lea.vmem %s1340_s18, 2048  ;;  %p1648_p1 = scmp.lt.s32.totalorder %s1340_s18, %s1340_s18 }
   0x8   :  { %92 = vrot.lane.b32.xlu1 %v87_v5, %s1667_s0  ;;  %90 = vrot.lane.b32.xlu0 %v86_v6, %s1667_s0  ;;  %p1644_p0 = scmp.ne.s32.totalorder %s1340_s18, %s1643_s19  ;;  %p1649_p2 = scmp.lt.s32.totalorder %s1643_s19, %s1643_s19 }
   0xa   :  { %p1650_p3 = por %p1649_p2, %p1648_p1 }
   0xc   :  { %p1651_p4 = pnand %p1650_p3, %p1644_p0 }
  0x76   :  { %v80_v7 = vpop.permute.xlu1 %79  ;;  %v78_v8 = vpop.permute.xlu0 %77 }
  0x77   :  { %85 = vst.msk [vmem:[#allocation2 + $0x8] sm:$0xff] %vm83_vm1, %v80_v7  ;;  %84 = vst.msk [vmem:[#allocation2] sm:$0xff] %vm83_vm1, %v78_v8 }
  0x7a   :  { %v93_v9 = vpop.permute.xlu1 %92  ;;  %v91_v10 = vpop.permute.xlu0 %90 }
  0x7b   :  { %98 = vst.msk [vmem:[#allocation2 + $0x8] sm:$0xff] %vm96_vm2, %v93_v9  ;;  %97 = vst.msk [vmem:[#allocation2] sm:$0xff] %vm96_vm2, %v91_v10 }
  0x82   :  { %v99_v11 = vld [vmem:[#allocation2] sm:$0xff]  ;;  %v100_v12 = vld [vmem:[#allocation2 + $0x8] sm:$0xff] }
  0x83   :  { %117 = vxpose.xlu0.b32.start [1/2] (short) %v99_v11, 128  ;;  %v1699_v13 = vand.u32 4294901760, %v99_v11  ;;  %v1701_v14 = vand.u32 4294901760, %v100_v12 }
  0x85   :  { %v462_v15 = vsub.f32 %v99_v11, %v1699_v13  ;;  %1470 = vmatprep.subr.mxu0 %v1701_v14  ;;  %v455_v16 = vsub.f32 %v100_v12, %v1701_v14 }
  0x86   :  { %1471 = vmatpush3.msra.mxu0 %v1701_v14 }
  0x87   :  { %118 = vxpose.xlu0.b32.end [2/2] (short) %v100_v12, 128  ;;  %1472 = vmatprep.subr.mxu0 %v1699_v13  ;;  %v1708_v17 = vand.u32 4294901760, %v455_v16  ;;  %v1710_v18 = vand.u32 4294901760, %v462_v15 }
  0x88   :  { %1473 = vmatpush3.msra.mxu0 %v1699_v13 }
  0x89   :  { %1526 = vmatprep.subr.mxu0 %v455_v16  ;;  %v457_v19 = vsub.f32 %v455_v16, %v1708_v17  ;;  %v464_v20 = vsub.f32 %v462_v15, %v1710_v18 }
  0x8b   :  { %v458_v21 = vand.u32 4294901760, %v457_v19  ;;  %v465_v22 = vand.u32 4294901760, %v464_v20 }
  0x8d   :  { %1498 = vmatprep.subr.mxu1 %v458_v21 }
  0x8e   :  { %1499 = vmatpush3.msra.mxu1 %v458_v21 }
  0x8f   :  { %1500 = vmatprep.subr.mxu1 %v465_v22 }
  0x90   :  { %1501 = vmatpush3.msra.mxu1 %v465_v22 }
  0x91   :  { %1554 = vmatprep.subr.mxu1 %v1701_v14 }
  0xff   :  { %v133_v23 = vpop.trf.xlu0 }
 0x100   :  { %v151_v24 = vsel %vm149_vm3, %v133_v23, 0 }
 0x101   :  { %v1717_v25 = vand.u32 4294901760, %v151_v24 }
 0x103   :  { %v1720_v26 = vsub.f32 %v151_v24, %v1717_v25  ;;  %1502 = vmatprep.mubr.f32.mxu1 %v1717_v25  ;;  %v134_v27 = vpop.trf.xlu0 }
 0x104   :  { %v154_v28 = vsel %vm149_vm3, %v134_v27, 0 }
 0x105   :  { %v1724_v29 = vand.u32 4294901760, %v154_v28  ;;  %v267_v30 = vand.u32 4294901760, %v1720_v26 }
 0x107   :  { %v1728_v31 = vsub.f32 %v154_v28, %v1724_v29  ;;  %v135_v32 = vpop.trf.xlu0  ;;  %1503 = vmatmul.mubr.f32.vlgmr.msra.gmra.mxu1 %v1724_v29  ;;  %v268_v33 = vsub.f32 %v1720_v26, %v267_v30 }
 0x108   :  { %v157_v34 = vsel %vm149_vm3, %v135_v32, 0  ;;  %1555 = vmatpush3.msra.mxu1 %v1701_v14 }
 0x109   :  { %v277_v35 = vand.u32 4294901760, %v1728_v31  ;;  %v1737_v36 = vand.u32 4294901760, %v157_v34  ;;  %1556 = vmatprep.subr.mxu1 %v1699_v13  ;;  %v269_v37 = vand.u32 4294901760, %v268_v33 }
 0x10a   :  { %1557 = vmatpush3.msra.mxu1 %v1699_v13 }
 0x10b   :  { %v1742_v38 = vsub.f32 %v157_v34, %v1737_v36  ;;  %1610 = vmatprep.subr.mxu1 %v1701_v14  ;;  %1474 = vmatprep.mubr.f32.mxu0 %v269_v37  ;;  %v136_v39 = vpop.trf.xlu0  ;;  %v278_v40 = vsub.f32 %v1728_v31, %v277_v35 }
 0x10c   :  { %v160_v41 = vsel %vm149_vm3, %v136_v39, 0  ;;  %1505 = vmatprep.mubr.f32.mxu1 %v1737_v36 }
 0x10d   :  { %v287_v42 = vand.u32 4294901760, %v1742_v38  ;;  %v1751_v43 = vand.u32 4294901760, %v160_v41  ;;  %v279_v44 = vand.u32 4294901760, %v278_v40 }
 0x10f   :  { %v1754_v45 = vsub.f32 %v160_v41, %v1751_v43  ;;  %v137_v46 = vpop.trf.xlu0  ;;  %1475 = vmatmul.mubr.f32.vlgmr.msra.gmra.mxu0 %v279_v44  ;;  %1506 = vmatmul.mubr.f32.gmra.mxu1 %v1751_v43  ;;  %v288_v47 = vsub.f32 %v1742_v38, %v287_v42 }
 0x110   :  { %v163_v48 = vsel %vm149_vm3, %v137_v46, 0  ;;  %1527 = vmatpush3.msra.mxu0 %v455_v16 }
 0x111   :  { %v297_v49 = vand.u32 4294901760, %v1754_v45  ;;  %v1762_v50 = vand.u32 4294901760, %v163_v48  ;;  %1528 = vmatprep.subr.mxu0 %v462_v15  ;;  %v289_v51 = vand.u32 4294901760, %v288_v47 }
 0x112   :  { %1529 = vmatpush3.msra.mxu0 %v462_v15 }
 0x113   :  { %v1765_v52 = vsub.f32 %v163_v48, %v1762_v50  ;;  %1582 = vmatprep.subr.mxu0 %v1708_v17  ;;  %v138_v53 = vpop.trf.xlu0  ;;  %1477 = vmatprep.mubr.f32.mxu0 %v289_v51  ;;  %v298_v54 = vsub.f32 %v1754_v45, %v297_v49 }
 0x114   :  { %v166_v55 = vsel %vm149_vm3, %v138_v53, 0  ;;  %1508 = vmatprep.mubr.f32.mxu1 %v1762_v50 }
 0x115   :  { %v307_v56 = vand.u32 4294901760, %v1765_v52  ;;  %v1774_v57 = vand.u32 4294901760, %v166_v55  ;;  %v299_v58 = vand.u32 4294901760, %v298_v54 }
 0x117   :  { %v1777_v59 = vsub.f32 %v166_v55, %v1774_v57  ;;  %v139_v60 = vpop.trf.xlu0  ;;  %1478 = vmatmul.mubr.f32.gmra.mxu0 %v299_v58  ;;  %1509 = vmatmul.mubr.f32.gmra.mxu1 %v1774_v57  ;;  %v308_v61 = vsub.f32 %v1765_v52, %v307_v56 }
 0x118   :  { %v169_v62 = vsel %vm149_vm3, %v139_v60, 0 }
 0x119   :  { %v317_v63 = vand.u32 4294901760, %v1777_v59  ;;  %v1785_v0 = vand.u32 4294901760, %v169_v62  ;;  %v309_v1 = vand.u32 4294901760, %v308_v61 }
 0x11b   :  { %v1788_v2 = vsub.f32 %v169_v62, %v1785_v0  ;;  %v140_v3 = vpop.trf.xlu0  ;;  %1480 = vmatprep.mubr.f32.mxu0 %v309_v1  ;;  %1511 = vmatprep.mubr.f32.mxu1 %v1785_v0  ;;  %v318_v4 = vsub.f32 %v1777_v59, %v317_v63 }
 0x11c   :  { %v172_v5 = vsel %vm149_vm3, %v140_v3, 0 }
 0x11d   :  { %v327_v6 = vand.u32 4294901760, %v1788_v2  ;;  %v1796_v7 = vand.u32 4294901760, %v172_v5  ;;  %v319_v8 = vand.u32 4294901760, %v318_v4 }
 0x11f   :  { %v1799_v9 = vsub.f32 %v172_v5, %v1796_v7  ;;  %v141_v10 = vpop.trf.xlu0  ;;  %1481 = vmatmul.mubr.f32.gmra.mxu0 %v319_v8  ;;  %1512 = vmatmul.mubr.f32.gmra.mxu1 %v1796_v7  ;;  %v328_v11 = vsub.f32 %v1788_v2, %v327_v6 }
 0x120   :  { %v175_v12 = vsel %vm149_vm3, %v141_v10, 0 }
 0x121   :  { %v337_v15 = vand.u32 4294901760, %v1799_v9  ;;  %v1807_v16 = vand.u32 4294901760, %v175_v12  ;;  %v329_v19 = vand.u32 4294901760, %v328_v11 }
 0x123   :  { %v1810_v20 = vsub.f32 %v175_v12, %v1807_v16  ;;  %v142_v21 = vpop.trf.xlu0  ;;  %1483 = vmatprep.mubr.f32.mxu0 %v329_v19  ;;  %1514 = vmatprep.mubr.f32.mxu1 %v1807_v16  ;;  %v338_v22 = vsub.f32 %v1799_v9, %v337_v15 }
 0x124   :  { %v178_v23 = vsel %vm149_vm3, %v142_v21, 0 }
 0x125   :  { %v347_v24 = vand.u32 4294901760, %v1810_v20  ;;  %v1818_v27 = vand.u32 4294901760, %v178_v23  ;;  %v339_v28 = vand.u32 4294901760, %v338_v22 }
 0x127   :  { %v1821_v32 = vsub.f32 %v178_v23, %v1818_v27  ;;  %v143_v33 = vpop.trf.xlu0  ;;  %1484 = vmatmul.mubr.f32.gmra.mxu0 %v339_v28  ;;  %1515 = vmatmul.mubr.f32.gmra.mxu1 %v1818_v27  ;;  %v348_v34 = vsub.f32 %v1810_v20, %v347_v24 }
 0x128   :  { %v181_v37 = vsel %vm149_vm3, %v143_v33, 0 }
 0x129   :  { %v357_v39 = vand.u32 4294901760, %v1821_v32  ;;  %v1829_v40 = vand.u32 4294901760, %v181_v37  ;;  %v349_v41 = vand.u32 4294901760, %v348_v34 }
 0x12b   :  { %v1832_v44 = vsub.f32 %v181_v37, %v1829_v40  ;;  %v144_v46 = vpop.trf.xlu0  ;;  %1486 = vmatprep.mubr.f32.mxu0 %v349_v41  ;;  %1517 = vmatprep.mubr.f32.mxu1 %v1829_v40  ;;  %v358_v47 = vsub.f32 %v1821_v32, %v357_v39 }
 0x12c   :  { %v184_v48 = vsel %vm149_vm3, %v144_v46, 0 }
 0x12d   :  { %v367_v51 = vand.u32 4294901760, %v1832_v44  ;;  %v1840_v53 = vand.u32 4294901760, %v184_v48  ;;  %v359_v54 = vand.u32 4294901760, %v358_v47 }
 0x12f   :  { %v1843_v55 = vsub.f32 %v184_v48, %v1840_v53  ;;  %v145_v58 = vpop.trf.xlu0  ;;  %1487 = vmatmul.mubr.f32.gmra.mxu0 %v359_v54  ;;  %1518 = vmatmul.mubr.f32.gmra.mxu1 %v1840_v53  ;;  %v368_v60 = vsub.f32 %v1832_v44, %v367_v51 }
 0x130   :  { %v187_v61 = vsel %vm149_vm3, %v145_v58, 0 }
 0x131   :  { %v377_v62 = vand.u32 4294901760, %v1843_v55  ;;  %v1851_v1 = vand.u32 4294901760, %v187_v61  ;;  %v369_v3 = vand.u32 4294901760, %v368_v60 }
 0x133   :  { %v1854_v4 = vsub.f32 %v187_v61, %v1851_v1  ;;  %v146_v5 = vpop.trf.xlu0  ;;  %1489 = vmatprep.mubr.f32.mxu0 %v369_v3  ;;  %1520 = vmatprep.mubr.f32.mxu1 %v1851_v1  ;;  %v378_v8 = vsub.f32 %v1843_v55, %v377_v62 }
 0x134   :  { %v190_v10 = vsel %vm149_vm3, %v146_v5, 0 }
 0x135   :  { %v387_v11 = vand.u32 4294901760, %v1854_v4  ;;  %v1862_v12 = vand.u32 4294901760, %v190_v10  ;;  %v379_v19 = vand.u32 4294901760, %v378_v8 }
 0x137   :  { %v1865_v21 = vsub.f32 %v190_v10, %v1862_v12  ;;  %v147_v22 = vpop.trf.xlu0  ;;  %1490 = vmatmul.mubr.f32.gmra.mxu0 %v379_v19  ;;  %1521 = vmatmul.mubr.f32.gmra.mxu1 %v1862_v12  ;;  %v388_v23 = vsub.f32 %v1854_v4, %v387_v11 }
 0x138   :  { %v193_v28 = vsel %vm149_vm3, %v147_v22, 0 }
 0x139   :  { %v397_v33 = vand.u32 4294901760, %v1865_v21  ;;  %v1871_v34 = vand.u32 4294901760, %v193_v28  ;;  %v389_v37 = vand.u32 4294901760, %v388_v23 }
 0x13b   :  { %v406_v41 = vsub.f32 %v193_v28, %v1871_v34  ;;  %v148_v46 = vpop.trf.xlu0  ;;  %1492 = vmatprep.mubr.f32.mxu0 %v389_v37  ;;  %1523 = vmatprep.mubr.f32.mxu1 %v1871_v34  ;;  %v398_v47 = vsub.f32 %v1865_v21, %v397_v33 }
 0x13c   :  { %v196_v48 = vsel %vm149_vm3, %v148_v46, 0 }
 0x13d   :  { %v407_v54 = vand.u32 4294901760, %v406_v41  ;;  %v1877_v58 = vand.u32 4294901760, %v196_v48  ;;  %v399_v60 = vand.u32 4294901760, %v398_v47 }
 0x13f   :  { %v416_v61 = vsub.f32 %v196_v48, %v1877_v58  ;;  %1493 = vmatmul.mubr.f32.gmra.mxu0 %v399_v60  ;;  %1524 = vmatmul.mubr.f32.gmra.mxu1 %v1877_v58  ;;  %v408_v3 = vsub.f32 %v406_v41, %v407_v54 }
 0x140   :  { %1558 = vmatprep.mubr.f32.mxu1 %v267_v30 }
 0x141   :  { %v417_v5 = vand.u32 4294901760, %v416_v61  ;;  %v409_v8 = vand.u32 4294901760, %v408_v3 }
 0x143   :  { %1495 = vmatprep.mubr.f32.mxu0 %v409_v8  ;;  %1559 = vmatmul.mubr.f32.vlgmr.msra.gmra.mxu1 %v277_v35  ;;  %v418_v10 = vsub.f32 %v416_v61, %v417_v5 }
 0x144   :  { %1611 = vmatpush3.msra.mxu1 %v1701_v14  ;;  %1561 = vmatprep.mubr.f32.mxu1 %v287_v42 }
 0x145   :  { %1612 = vmatprep.subr.mxu1 %v1699_v13  ;;  %v419_v19 = vand.u32 4294901760, %v418_v10 }
 0x146   :  { %1613 = vmatpush3.msra.mxu1 %v1699_v13 }
 0x147   :  { %1496 = vmatmul.mubr.f32.gmra.mxu0 %v419_v19  ;;  %1562 = vmatmul.mubr.f32.gmra.mxu1 %v297_v49 }
 0x148   :  { %1530 = vmatprep.mubr.f32.mxu0 %v1720_v26  ;;  %1564 = vmatprep.mubr.f32.mxu1 %v307_v56 }
 0x14b   :  { %1531 = vmatmul.mubr.f32.vlgmr.msra.gmra.mxu0 %v1728_v31  ;;  %1565 = vmatmul.mubr.f32.gmra.mxu1 %v317_v63 }
 0x14c   :  { %1583 = vmatpush3.msra.mxu0 %v1708_v17  ;;  %1533 = vmatprep.mubr.f32.mxu0 %v1742_v38 }
 0x14d   :  { %1567 = vmatprep.mubr.f32.mxu1 %v327_v6  ;;  %1584 = vmatprep.subr.mxu0 %v1710_v18 }
 0x14e   :  { %1585 = vmatpush3.msra.mxu0 %v1710_v18 }
 0x14f   :  { %1534 = vmatmul.mubr.f32.gmra.mxu0 %v1754_v45  ;;  %1568 = vmatmul.mubr.f32.gmra.mxu1 %v337_v15 }
 0x150   :  { %1536 = vmatprep.mubr.f32.mxu0 %v1765_v52  ;;  %1570 = vmatprep.mubr.f32.mxu1 %v347_v24 }
 0x153   :  { %1537 = vmatmul.mubr.f32.gmra.mxu0 %v1777_v59  ;;  %1571 = vmatmul.mubr.f32.gmra.mxu1 %v357_v39 }
 0x154   :  { %1539 = vmatprep.mubr.f32.mxu0 %v1788_v2  ;;  %1573 = vmatprep.mubr.f32.mxu1 %v367_v51 }
 0x157   :  { %1540 = vmatmul.mubr.f32.gmra.mxu0 %v1799_v9  ;;  %1574 = vmatmul.mubr.f32.gmra.mxu1 %v377_v62 }
 0x158   :  { %1542 = vmatprep.mubr.f32.mxu0 %v1810_v20  ;;  %1576 = vmatprep.mubr.f32.mxu1 %v387_v11 }
 0x15b   :  { %1543 = vmatmul.mubr.f32.gmra.mxu0 %v1821_v32  ;;  %1577 = vmatmul.mubr.f32.gmra.mxu1 %v397_v33 }
 0x15c   :  { %1545 = vmatprep.mubr.f32.mxu0 %v1832_v44  ;;  %1579 = vmatprep.mubr.f32.mxu1 %v407_v54 }
 0x15f   :  { %1546 = vmatmul.mubr.f32.gmra.mxu0 %v1843_v55  ;;  %1580 = vmatmul.mubr.f32.gmra.mxu1 %v417_v5 }
 0x160   :  { %1548 = vmatprep.mubr.f32.mxu0 %v1854_v4  ;;  %1614 = vmatprep.mubr.f32.mxu1 %v1717_v25 }
 0x163   :  { %1549 = vmatmul.mubr.f32.gmra.mxu0 %v1865_v21  ;;  %1615 = vmatmul.mubr.f32.vlgmr.msra.gmra.mxu1 %v1724_v29 }
 0x164   :  { %1551 = vmatprep.mubr.f32.mxu0 %v406_v41  ;;  %1617 = vmatprep.mubr.f32.mxu1 %v1737_v36 }
 0x167   :  { %1552 = vmatmul.mubr.f32.gmra.mxu0 %v416_v61  ;;  %1618 = vmatmul.mubr.f32.gmra.mxu1 %v1751_v43 }
 0x168   :  { %1586 = vmatprep.mubr.f32.mxu0 %v1717_v25  ;;  %1620 = vmatprep.mubr.f32.mxu1 %v1762_v50 }
 0x16b   :  { %1587 = vmatmul.mubr.f32.vlgmr.msra.gmra.mxu0 %v1724_v29  ;;  %1621 = vmatmul.mubr.f32.gmra.mxu1 %v1774_v57 }
 0x16c   :  { %1589 = vmatprep.mubr.f32.mxu0 %v1737_v36  ;;  %1623 = vmatprep.mubr.f32.mxu1 %v1785_v0 }
 0x16f   :  { %1590 = vmatmul.mubr.f32.gmra.mxu0 %v1751_v43  ;;  %1624 = vmatmul.mubr.f32.gmra.mxu1 %v1796_v7 }
 0x170   :  { %1592 = vmatprep.mubr.f32.mxu0 %v1762_v50  ;;  %1626 = vmatprep.mubr.f32.mxu1 %v1807_v16 }
 0x173   :  { %1593 = vmatmul.mubr.f32.gmra.mxu0 %v1774_v57  ;;  %1627 = vmatmul.mubr.f32.gmra.mxu1 %v1818_v27 }
 0x174   :  { %1595 = vmatprep.mubr.f32.mxu0 %v1785_v0  ;;  %1629 = vmatprep.mubr.f32.mxu1 %v1829_v40 }
 0x177   :  { %1596 = vmatmul.mubr.f32.gmra.mxu0 %v1796_v7  ;;  %1630 = vmatmul.mubr.f32.gmra.mxu1 %v1840_v53 }
 0x178   :  { %1598 = vmatprep.mubr.f32.mxu0 %v1807_v16  ;;  %1632 = vmatprep.mubr.f32.mxu1 %v1851_v1 }
 0x17b   :  { %1599 = vmatmul.mubr.f32.gmra.mxu0 %v1818_v27  ;;  %1633 = vmatmul.mubr.f32.gmra.mxu1 %v1862_v12 }
 0x17c   :  { %1601 = vmatprep.mubr.f32.mxu0 %v1829_v40  ;;  %1635 = vmatprep.mubr.f32.mxu1 %v1871_v34 }
 0x17f   :  { %1602 = vmatmul.mubr.f32.gmra.mxu0 %v1840_v53  ;;  %1636 = vmatmul.mubr.f32.gmra.mxu1 %v1877_v58 }
 0x180   :  { %1604 = vmatprep.mubr.f32.mxu0 %v1851_v1 }
 0x183   :  { %1605 = vmatmul.mubr.f32.gmra.mxu0 %v1862_v12 }
 0x184   :  { %1607 = vmatprep.mubr.f32.mxu0 %v1871_v34 }
 0x187   :  { %1608 = vmatmul.mubr.f32.gmra.mxu0 %v1877_v58 }
 0x1c7   :  { %v1504_v13 = vpop.f32.mrf.mxu1 }
 0x1c9   :  { %v1957_v14 = vpop.f32.mrf.mxu1 }
 0x1cf   :  { %v1959_v17 = vpop.f32.mrf.mxu1  ;;  %v1476_v18 = vpop.f32.mrf.mxu0 }
 0x1d0   :  { %v509_v10 = vadd.f32 %v1504_v13, %v1476_v18 }
 0x1d1   :  { %v1961_v25 = vpop.f32.mrf.mxu1  ;;  %v271_v26 = vpop.f32.mrf.mxu0 }
 0x1d7   :  { %v1963_v29 = vpop.f32.mrf.mxu1  ;;  %v1479_v30 = vpop.f32.mrf.mxu0 }
 0x1d9   :  { %v1965_v31 = vpop.f32.mrf.mxu1  ;;  %v1967_v35 = vpop.f32.mrf.mxu0 }
 0x1df   :  { %v1969_v36 = vpop.f32.mrf.mxu1  ;;  %v1971_v38 = vpop.f32.mrf.mxu0 }
 0x1e0   :  { %v533_v18 = vadd.f32 %v1963_v29, %v1971_v38 }
 0x1e1   :  { %v1973_v42 = vpop.f32.mrf.mxu1  ;;  %v1975_v43 = vpop.f32.mrf.mxu0 }
 0x1e7   :  { %v1977_v45 = vpop.f32.mrf.mxu1  ;;  %v1979_v49 = vpop.f32.mrf.mxu0 }
 0x1e9   :  { %v1981_v50 = vpop.f32.mrf.mxu1  ;;  %v1983_v52 = vpop.f32.mrf.mxu0 }
 0x1ef   :  { %v1985_v56 = vpop.f32.mrf.mxu1  ;;  %v1987_v57 = vpop.f32.mrf.mxu0 }
 0x1f1   :  { %v1989_v59 = vpop.f32.mrf.mxu1  ;;  %v1991_v63 = vpop.f32.mrf.mxu0 }
 0x1f7   :  { %v1993_v0 = vpop.f32.mrf.mxu1  ;;  %v1995_v2 = vpop.f32.mrf.mxu0 }
 0x1f9   :  { %v1997_v6 = vpop.f32.mrf.mxu1  ;;  %v1999_v7 = vpop.f32.mrf.mxu0 }
 0x1fa   :  { %2102 = vst [vmem:[#allocation6_spill] sm:$0xff] %v1997_v6 }
 0x1ff   :  { %v2001_v9 = vpop.f32.mrf.mxu1  ;;  %v2003_v15 = vpop.f32.mrf.mxu0 }
 0x200   :  { %2103 = vst [vmem:[#allocation7_spill] sm:$0xff] %v2001_v9  ;;  %v521_v9 = vadd.f32 %v1959_v17, %v1479_v30  ;;  %v527_v17 = vadd.f32 %v1965_v31, %v1975_v43 }
 0x201   :  { %v2005_v16 = vpop.f32.mrf.mxu1  ;;  %v2007_v24 = vpop.f32.mrf.mxu0 }
 0x202   :  { %2104 = vst [vmem:[#allocation8_spill] sm:$0xff] %v2005_v16 }
 0x203   :  { %v1560_v20 = vpop.f32.mrf.mxu1 }
 0x205   :  { %v848_v27 = vpop.f32.mrf.mxu1 }
 0x207   :  { %v2009_v32 = vpop.f32.mrf.mxu0  ;;  %v1563_v39 = vpop.f32.mrf.mxu1 }
 0x208   :  { %2105 = vst [vmem:[#allocation9_spill] sm:$0xff] %v2009_v32 }
 0x209   :  { %v2011_v40 = vpop.f32.mrf.mxu0  ;;  %v864_v44 = vpop.f32.mrf.mxu1 }
 0x20a   :  { %2106 = vst [vmem:[#allocation10_spill] sm:$0xff] %v2011_v40 }
 0x20b   :  { %v1532_v51 = vpop.f32.mrf.mxu0  ;;  %v1566_v53 = vpop.f32.mrf.mxu1 }
 0x20c   :  { %v676_v40 = vadd.f32 %v1532_v51, %v509_v10 }
 0x20d   :  { %v668_v55 = vpop.f32.mrf.mxu0  ;;  %v2013_v62 = vpop.f32.mrf.mxu1 }
 0x20e   :  { %v857_v13 = vadd.f32 %v1560_v20, %v676_v40 }
 0x20f   :  { %v1535_v1 = vpop.f32.mrf.mxu0  ;;  %v2015_v4 = vpop.f32.mrf.mxu1 }
 0x211   :  { %v682_v11 = vpop.f32.mrf.mxu0  ;;  %v2017_v12 = vpop.f32.mrf.mxu1 }
 0x213   :  { %v1538_v21 = vpop.f32.mrf.mxu0  ;;  %v2019_v22 = vpop.f32.mrf.mxu1 }
 0x214   :  { %v704_v30 = vadd.f32 %v1538_v21, %v533_v18 }
 0x215   :  { %v696_v23 = vpop.f32.mrf.mxu0  ;;  %v2021_v28 = vpop.f32.mrf.mxu1 }
 0x216   :  { %v889_v43 = vadd.f32 %v1566_v53, %v704_v30  ;;  %v2121_v30 = vld [vmem:[#allocation7_spill] sm:$0xff] }
 0x217   :  { %v1541_v33 = vpop.f32.mrf.mxu0  ;;  %v2023_v34 = vpop.f32.mrf.mxu1 }
 0x218   :  { %2107 = vst [vmem:[#allocation11_spill] sm:$0xff] %v2023_v34 }
 0x219   :  { %v710_v37 = vpop.f32.mrf.mxu0  ;;  %v2025_v41 = vpop.f32.mrf.mxu1 }
 0x21a   :  { %2108 = vst [vmem:[#allocation12_spill] sm:$0xff] %v2025_v41 }
 0x21b   :  { %v1544_v46 = vpop.f32.mrf.mxu0  ;;  %v2027_v47 = vpop.f32.mrf.mxu1 }
 0x21c   :  { %2109 = vst [vmem:[#allocation13_spill] sm:$0xff] %v2027_v47  ;;  %v503_v47 = vadd.f32 %v1957_v14, %v271_v26 }
 0x21d   :  { %v2029_v48 = vpop.f32.mrf.mxu0  ;;  %v2031_v54 = vpop.f32.mrf.mxu1 }
 0x21e   :  { %2110 = vst [vmem:[#allocation14_spill] sm:$0xff] %v2031_v54 }
 0x21f   :  { %v2033_v58 = vpop.f32.mrf.mxu0  ;;  %v2035_v60 = vpop.f32.mrf.mxu1 }
 0x220   :  { %2111 = vst [vmem:[#allocation15_spill] sm:$0xff] %v2035_v60  ;;  %v669_v60 = vadd.f32 %v668_v55, %v503_v47 }
 0x221   :  { %v2037_v61 = vpop.f32.mrf.mxu0  ;;  %v2039_v3 = vpop.f32.mrf.mxu1 }
 0x222   :  { %2112 = vst [vmem:[#allocation16_spill] sm:$0xff] %v2039_v3  ;;  %v515_v3 = vadd.f32 %v1961_v25, %v1967_v35  ;;  %v849_v10 = vadd.f32 %v848_v27, %v669_v60  ;;  %v545_v25 = vadd.f32 %v1969_v36, %v1979_v49  ;;  %v697_v35 = vadd.f32 %v696_v23, %v527_v17  ;;  %v2119_v17 = vld [vmem:[#allocation11_spill] sm:$0xff] }
 0x223   :  { %v2041_v5 = vpop.f32.mrf.mxu0  ;;  %v1616_v8 = vpop.f32.mrf.mxu1  ;;  %v539_v27 = vadd.f32 %v1973_v42, %v1983_v52  ;;  %v551_v42 = vadd.f32 %v1981_v50, %v1991_v63  ;;  %v563_v63 = vadd.f32 %v1989_v59, %v1999_v7  ;;  %v2117_v7 = vld [vmem:[#allocation6_spill] sm:$0xff] }
 0x224   :  { %2113 = vst [vmem:[#allocation17_spill] sm:$0xff] %v2041_v5  ;;  %v690_v5 = vadd.f32 %v1535_v1, %v521_v9  ;;  %v683_v26 = vadd.f32 %v682_v11, %v515_v3  ;;  %v718_v11 = vadd.f32 %v1541_v33, %v545_v25  ;;  %v881_v23 = vadd.f32 %v2013_v62, %v697_v35 }
 0x225   :  { %v2043_v19 = vpop.f32.mrf.mxu0  ;;  %v1208_v16 = vpop.f32.mrf.mxu1 }
 0x226   :  { %2114 = vst [vmem:[#allocation18_spill] sm:$0xff] %v2043_v19  ;;  %v873_v6 = vadd.f32 %v1563_v39, %v690_v5  ;;  %v865_v40 = vadd.f32 %v864_v44, %v683_v26  ;;  %v557_v39 = vadd.f32 %v1977_v45, %v1987_v57  ;;  %v569_v45 = vadd.f32 %v1985_v56, %v1995_v2 }
 0x227   :  { %v2046_v41 = vpop.f32.mrf.mxu0  ;;  %v1619_v54 = vpop.f32.mrf.mxu1  ;;  %v725_v57 = vadd.f32 %v2029_v48, %v551_v42  ;;  %v581_v2 = vadd.f32 %v1993_v0, %v2003_v15  ;;  %v2120_v15 = vld [vmem:[#allocation9_spill] sm:$0xff] }
 0x228   :  { %2115 = vst [vmem:[#allocation19_spill] sm:$0xff] %v2046_v41  ;;  %v732_v52 = vadd.f32 %v1544_v46, %v557_v39 }
 0x229   :  { %v2049_v32 = vpop.f32.mrf.mxu0  ;;  %v1220_v34 = vpop.f32.mrf.mxu1 }
 0x22a   :  { %2116 = vst [vmem:[#allocation20_spill] sm:$0xff] %v2049_v32  ;;  %v921_v5 = vadd.f32 %v2019_v22, %v732_v52  ;;  %v575_v22 = vadd.f32 %v2117_v7, %v2007_v24 }
 0x22b   :  { %v1588_v19 = vpop.f32.mrf.mxu0  ;;  %v1622_v14 = vpop.f32.mrf.mxu1 }
 0x22c   :  { %v1052_v51 = vadd.f32 %v1588_v19, %v857_v13  ;;  %v913_v13 = vadd.f32 %v2021_v28, %v725_v57 }
 0x22d   :  { %v1045_v55 = vpop.f32.mrf.mxu0  ;;  %v1232_v47 = vpop.f32.mrf.mxu1  ;;  %v2122_v28 = vld [vmem:[#allocation18_spill] sm:$0xff] }
 0x22e   :  { %v1215_v32 = vadd.f32 %v1616_v8, %v1052_v51  ;;  %v1046_v41 = vadd.f32 %v1045_v55, %v849_v10  ;;  %v593_v55 = vadd.f32 %v2121_v30, %v2120_v15 }
 0x22f   :  { %v1591_v9 = vpop.f32.mrf.mxu0  ;;  %v1625_v29 = vpop.f32.mrf.mxu1 }
 0x230   :  { %v1209_v38 = vadd.f32 %v1208_v16, %v1046_v41  ;;  %v1064_v20 = vadd.f32 %v1591_v9, %v873_v6  ;;  %1319 = vst [vmem:[#allocation3 + $0x8] sm:$0xff] %v1215_v32  ;;  %v711_v16 = vadd.f32 %v710_v37, %v539_v27 }
 0x231   :  { %v1057_v1 = vpop.f32.mrf.mxu0  ;;  %v1244_v31 = vpop.f32.mrf.mxu1 }
 0x232   :  { %v1227_v21 = vadd.f32 %v1619_v54, %v1064_v20  ;;  %v1058_v60 = vadd.f32 %v1057_v1, %v865_v40  ;;  %1318 = vst [vmem:[#allocation3] sm:$0xff] %v1209_v38  ;;  %v905_v54 = vadd.f32 %v2015_v4, %v718_v11  ;;  %v897_v50 = vadd.f32 %v2017_v12, %v711_v16  ;;  %v2124_v38 = vld [vmem:[#allocation10_spill] sm:$0xff]  ;;  %v2125_v20 = vld [vmem:[#allocation8_spill] sm:$0xff]  ;;  %v2126_v1 = vld [vmem:[#allocation13_spill] sm:$0xff] }
 0x233   :  { %v1594_v36 = vpop.f32.mrf.mxu0  ;;  %v1628_v49 = vpop.f32.mrf.mxu1  ;;  %v746_v4 = vadd.f32 %v2033_v58, %v569_v45  ;;  %v739_v12 = vadd.f32 %v2037_v61, %v563_v63  ;;  %v587_v40 = vadd.f32 %v2125_v20, %v2124_v38  ;;  %v2129_v16 = vld [vmem:[#allocation20_spill] sm:$0xff] }
 0x234   :  { %v1221_v6 = vadd.f32 %v1220_v34, %v1058_v60  ;;  %v1076_v44 = vadd.f32 %v1594_v36, %v889_v43  ;;  %1321 = vst [vmem:[#allocation3 + $0x18] sm:$0xff] %v1227_v21  ;;  %v2127_v43 = vld [vmem:[#allocation19_spill] sm:$0xff] }
 0x235   :  { %v1069_v53 = vpop.f32.mrf.mxu0  ;;  %v1256_v33 = vpop.f32.mrf.mxu1  ;;  %v937_v0 = vadd.f32 %v2119_v17, %v746_v4  ;;  %v774_v11 = vadd.f32 %v2127_v43, %v593_v55 }
 0x236   :  { %v1239_v32 = vadd.f32 %v1622_v14, %v1076_v44  ;;  %v1070_v41 = vadd.f32 %v1069_v53, %v881_v23  ;;  %1320 = vst [vmem:[#allocation3 + $0x10] sm:$0xff] %v1221_v6  ;;  %v2118_v14 = vld [vmem:[#allocation17_spill] sm:$0xff]  ;;  %v767_v6 = vadd.f32 %v2129_v16, %v587_v40 }
 0x237   :  { %v1597_v62 = vpop.f32.mrf.mxu0  ;;  %v1631_v37 = vpop.f32.mrf.mxu1  ;;  %v760_v58 = vadd.f32 %v2118_v14, %v581_v2 }
 0x238   :  { %v1233_v34 = vadd.f32 %v1232_v47, %v1070_v41  ;;  %v1088_v3 = vadd.f32 %v1597_v62, %v905_v54  ;;  %1323 = vst [vmem:[#allocation3 + $0x28] sm:$0xff] %v1239_v32  ;;  %v753_v47 = vadd.f32 %v2122_v28, %v575_v22  ;;  %v2130_v32 = vld [vmem:[#allocation15_spill] sm:$0xff] }
 0x239   :  { %v1081_v46 = vpop.f32.mrf.mxu0  ;;  %v1268_v48 = vpop.f32.mrf.mxu1  ;;  %v969_v41 = vadd.f32 %v2130_v32, %v774_v11 }
 0x23a   :  { %v1251_v8 = vadd.f32 %v1625_v29, %v1088_v3  ;;  %v1082_v56 = vadd.f32 %v1081_v46, %v897_v50  ;;  %1322 = vst [vmem:[#allocation3 + $0x20] sm:$0xff] %v1233_v34  ;;  %v2123_v29 = vld [vmem:[#allocation12_spill] sm:$0xff] }
 0x23b   :  { %v1600_v19 = vpop.f32.mrf.mxu0  ;;  %v1634_v61 = vpop.f32.mrf.mxu1  ;;  %v929_v24 = vadd.f32 %v2123_v29, %v739_v12 }
 0x23c   :  { %v1245_v18 = vadd.f32 %v1244_v31, %v1082_v56  ;;  %v1100_v59 = vadd.f32 %v1600_v19, %v921_v5  ;;  %1325 = vst [vmem:[#allocation3 + $0x38] sm:$0xff] %v1251_v8  ;;  %v953_v31 = vadd.f32 %v2126_v1, %v760_v58 }
 0x23d   :  { %v1093_v26 = vpop.f32.mrf.mxu0  ;;  %v1280_v39 = vpop.f32.mrf.mxu1 }
 0x23e   :  { %v1263_v51 = vadd.f32 %v1628_v49, %v1100_v59  ;;  %v1094_v10 = vadd.f32 %v1093_v26, %v913_v13  ;;  %1324 = vst [vmem:[#allocation3 + $0x30] sm:$0xff] %v1245_v18  ;;  %v2128_v49 = vld [vmem:[#allocation14_spill] sm:$0xff] }
 0x23f   :  { %v1603_v25 = vpop.f32.mrf.mxu0  ;;  %v945_v23 = vadd.f32 %v2128_v49, %v753_v47  ;;  %v1637_v54 = vpop.f32.mrf.mxu1 }
 0x240   :  { %v1257_v35 = vadd.f32 %v1256_v33, %v1094_v10  ;;  %v1112_v9 = vadd.f32 %v1603_v25, %v937_v0  ;;  %1327 = vst [vmem:[#allocation3 + $0x48] sm:$0xff] %v1263_v51 }
 0x241   :  { %v1105_v27 = vpop.f32.mrf.mxu0  ;;  %v1292_v46 = vpop.f32.mrf.mxu1 }
 0x242   :  { %v1275_v21 = vadd.f32 %v1631_v37, %v1112_v9  ;;  %v1106_v60 = vadd.f32 %v1105_v27, %v929_v24  ;;  %1326 = vst [vmem:[#allocation3 + $0x40] sm:$0xff] %v1257_v35  ;;  %v2131_v37 = vld [vmem:[#allocation16_spill] sm:$0xff] }
 0x243   :  { %v1606_v36 = vpop.f32.mrf.mxu0  ;;  %v961_v34 = vadd.f32 %v2131_v37, %v767_v6 }
 0x244   :  { %v1269_v44 = vadd.f32 %v1268_v48, %v1106_v60  ;;  %v1124_v42 = vadd.f32 %v1606_v36, %v953_v31  ;;  %1329 = vst [vmem:[#allocation3 + $0x58] sm:$0xff] %v1275_v21 }
 0x245   :  { %v1117_v52 = vpop.f32.mrf.mxu0 }
 0x246   :  { %v1287_v53 = vadd.f32 %v1634_v61, %v1124_v42  ;;  %v1118_v33 = vadd.f32 %v1117_v52, %v945_v23  ;;  %1328 = vst [vmem:[#allocation3 + $0x50] sm:$0xff] %v1269_v44 }
 0x247   :  { %v1609_v45 = vpop.f32.mrf.mxu0 }
 0x248   :  { %v1281_v57 = vadd.f32 %v1280_v39, %v1118_v33  ;;  %v1136_v62 = vadd.f32 %v1609_v45, %v969_v41  ;;  %1331 = vst [vmem:[#allocation3 + $0x68] sm:$0xff] %v1287_v53 }
 0x249   :  { %v1129_v3 = vpop.f32.mrf.mxu0 }
 0x24a   :  { %v1299_v50 = vadd.f32 %v1637_v54, %v1136_v62  ;;  %v1130_v63 = vadd.f32 %v1129_v3, %v961_v34  ;;  %1330 = vst [vmem:[#allocation3 + $0x60] sm:$0xff] %v1281_v57 }
 0x24c   :  { %v1293_v5 = vadd.f32 %v1292_v46, %v1130_v63  ;;  %1333 = vst [vmem:[#allocation3 + $0x78] sm:$0xff] %v1299_v50 }
 0x24e   :  { %1332 = vst [vmem:[#allocation3 + $0x70] sm:$0xff] %v1293_v5 }
 0x24f   :  { %1654 = shalt.err (!%p1651_p4)
}
 0x250   :  { %s1669_s20 = smov 128  }
 0x251   :  { %1345 = dma.vmem_to_hbm [thread:$0]  %s1340_s18, 2048, %s2101_s2, [#allocation4], %s1669_s20, %s1669_s20, %s1667_s0  }
 0x252   :  { %1663 = dma.done.wait [#allocation4], 2048  }
 0x253   :  { %1664 = vsyncadd [#allocation4], 4294965248 }
 0x254   :  { %1349 = vsyncpa [#allocation4], 1 }

</bundles_post_ra>
